<compile_context>
chip_gen: v7x
topology: tpu7x:2x2x1
jax: 0.10.0
libtpu: 0.0.40
codegen_flags: <defaults>
</compile_context>

<pallas_src>
import functools

import numpy as np
import jax
import jax.numpy as jnp
from jax.experimental import pallas as pl
from jax.experimental.pallas import tpu as pltpu


# ---------------------------------------------------------------------------
# Kernel
# ---------------------------------------------------------------------------
def _residual_block_kernel(x_ref, wb1_ref, wb2_ref, red_ref, bcast_ref,
                           g1_ref, b1_ref, a1_ref, g2_ref, b2_ref,
                           out_ref, pad_ref, *, h, inv_count, eps):
    L = x_ref.shape[1]                 # fused N*W*C lane axis (128 here)
    hp1 = h + 1

    # Zero only the two height-halo rows, once; they stay zero for both convs.
    zrow = jnp.zeros((1, L), pad_ref.dtype)
    pad_ref[0:1, :] = zrow
    pad_ref[hp1:hp1 + 1, :] = zrow

    def conv3x3_bn(act, wb_ref, g_ref, b_ref):
        # act: (h, L) f32.  3x3 'same' conv (no bias) + training-mode BN.
        # Interior write is the only bf16 cast; width taps and the N block
        # structure are folded into the banded weight, so the conv is just
        # 3 dy-shifted lane-dense matmuls accumulating in f32.
        pad_ref[1:hp1, :] = act.astype(pad_ref.dtype)
        y = jnp.dot(pad_ref[0:h, :], wb_ref[0],
                    preferred_element_type=jnp.float32)
        y = y + jnp.dot(pad_ref[1:1 + h, :], wb_ref[1],
                        preferred_element_type=jnp.float32)
        y = y + jnp.dot(pad_ref[2:2 + h, :], wb_ref[2],
                        preferred_element_type=jnp.float32)

        # BatchNorm2d batch statistics, two-pass (numerically robust).
        # red_ref:   (L, 128) indicator  lane -> channel   (reduce)
        # bcast_ref: (128, L) indicator  channel -> lane    (tile back)
        ysum = jnp.sum(y, axis=0, keepdims=True)                      # (1, L)
        mean_c = jnp.dot(ysum, red_ref[...],
                         preferred_element_type=jnp.float32) * inv_count
        mean_l = jnp.dot(mean_c, bcast_ref[...],
                         preferred_element_type=jnp.float32)          # (1, L)
        d = y - mean_l
        vsum = jnp.sum(d * d, axis=0, keepdims=True)                  # (1, L)
        var_c = jnp.dot(vsum, red_ref[...],
                        preferred_element_type=jnp.float32) * inv_count
        var_l = jnp.dot(var_c, bcast_ref[...],
                        preferred_element_type=jnp.float32)           # (1, L)
        return d * jax.lax.rsqrt(var_l + eps) * g_ref[...] + b_ref[...]

    x = x_ref[...]                                               # (h, L) f32
    y1 = conv3x3_bn(x, wb1_ref, g1_ref, b1_ref)
    y1 = jnp.where(y1 > 0, y1, a1_ref[...] * y1)                 # per-channel PReLU
    y2 = conv3x3_bn(y1, wb2_ref, g2_ref, b2_ref)
    out_ref[...] = x + y2                                        # residual add


# ---------------------------------------------------------------------------
# Wrapper
# ---------------------------------------------------------------------------
def _band_weights(w_hwio, n, width, chans):
    """Per-dy banded weights for the fused (n, w, c) lane axis.

    Returns (3, L, L) with L = n*width*chans and
      wb[dy, ni*W*C + wi*C + ci, no*W*C + w*C + co]
        = (ni == no) * w_hwio[dy, wi - w + 1, ci, co]
    for 0 <= wi - w + 1 < 3, zero elsewhere ('same' padding in width).
    """
    sel = np.zeros((3, width, width), np.float32)
    for dx in range(3):
        for w in range(width):
            wi = w + dx - 1
            if 0 <= wi < width:
                sel[dx, wi, w] = 1.0
    band = jnp.einsum('xiw,yxac->yiawc', jnp.asarray(sel), w_hwio)
    band = band.reshape(3, width * chans, width * chans)
    eye_n = jnp.eye(n, dtype=band.dtype)
    wb = jnp.einsum('ab,dpq->dapbq', eye_n, band)
    L = n * width * chans
    return wb.reshape(3, L, L)


def residual_block(x_nhwc, w1, g1, b1, a1, w2, g2, b2, eps=1e-5):
    n, h, w, c = x_nhwc.shape
    L = n * w * c                               # fused lane axis (multiple of 128 here)
    h_pad = ((h + 2 + 7) // 8) * 8              # sublane-aligned padded-height scratch

    # Banded bf16 conv weights: 3 dy slices, each (L, L), block-diagonal in n.
    wb1 = _band_weights(w1, n, w, c).astype(jnp.bfloat16)
    wb2 = _band_weights(w2, n, w, c).astype(jnp.bfloat16)

    # Factored BN reduce / tile-back indicator matrices (channel axis padded
    # to a full 128-lane width so both matmuls are lane-dense).
    c_pad = 128
    lane_c = np.arange(L) % c
    red = np.zeros((L, c_pad), np.float32)
    red[np.arange(L), lane_c] = 1.0
    bcast = np.ascontiguousarray(red.T)
    red = jnp.asarray(red)
    bcast = jnp.asarray(bcast)

    def tile_lanes(v):          # (C,) -> (1, L): per-channel value on every lane
        return jnp.tile(v.astype(jnp.float32), n * w).reshape(1, L)

    # Pack activations lane-dense: (N,H,W,C) -> (H, N*W*C).
    x2d = jnp.transpose(x_nhwc.astype(jnp.float32), (1, 0, 2, 3)).reshape(h, L)

    kernel = functools.partial(_residual_block_kernel, h=h,
                               inv_count=1.0 / float(n * h * w), eps=float(eps))

    out2d = pl.pallas_call(
        kernel,
        out_shape=jax.ShapeDtypeStruct((h, L), jnp.float32),
        scratch_shapes=[pltpu.VMEM((h_pad, L), jnp.bfloat16)],
    )(x2d, wb1, wb2, red, bcast,
      tile_lanes(g1), tile_lanes(b1), tile_lanes(a1),
      tile_lanes(g2), tile_lanes(b2))

    return jnp.transpose(out2d.reshape(h, n, w, c), (1, 0, 2, 3))


# ---------------------------------------------------------------------------
# Pure-JAX reference (mirrors the PyTorch module semantics)
# ---------------------------------------------------------------------------
def residual_block_ref(x_nhwc, w1, g1, b1, a1, w2, g2, b2, eps=1e-5):
    def conv_bn(x, wk, g, b):
        y = jax.lax.conv_general_dilated(
            x, wk, window_strides=(1, 1), padding=((1, 1), (1, 1)),
            dimension_numbers=("NHWC", "HWIO", "NHWC"),
            precision=jax.lax.Precision.HIGHEST)
        mu = jnp.mean(y, axis=(0, 1, 2), keepdims=True)
        var = jnp.mean((y - mu) ** 2, axis=(0, 1, 2), keepdims=True)
        return (y - mu) * jax.lax.rsqrt(var + eps) * g + b

    y1 = conv_bn(x_nhwc, w1, g1, b1)
    y1 = jnp.where(y1 > 0, y1, a1 * y1)
    y2 = conv_bn(y1, w2, g2, b2)
    return x_nhwc + y2


# ---------------------------------------------------------------------------
# Main
# ---------------------------------------------------------------------------
if __name__ == "__main__":
    N, C, H, W = 2, 4, 16, 16                 # matches PyTorch NCHW x: (2,4,16,16)
    key = jax.random.PRNGKey(0)
    kx, kw1, kw2, kg1, kb1, kg2, kb2, ka1 = jax.random.split(key, 8)

    # input in PyTorch NCHW convention, then transpose to kernel NHWC layout
    x_nchw = jax.random.normal(kx, (N, C, H, W), jnp.float32)
    x_nhwc = jnp.transpose(x_nchw, (0, 2, 3, 1))

    # deterministic parameter init (shapes per nn.Conv2d / BatchNorm2d / PReLU)
    scale = 1.0 / jnp.sqrt(9.0 * C)
    w1_oihw = scale * jax.random.normal(kw1, (C, C, 3, 3), jnp.float32)
    w2_oihw = scale * jax.random.normal(kw2, (C, C, 3, 3), jnp.float32)
    w1 = jnp.transpose(w1_oihw, (2, 3, 1, 0))  # OIHW -> HWIO
    w2 = jnp.transpose(w2_oihw, (2, 3, 1, 0))
    g1 = 1.0 + 0.1 * jax.random.normal(kg1, (C,), jnp.float32)
    b1 = 0.1 * jax.random.normal(kb1, (C,), jnp.float32)
    g2 = 1.0 + 0.1 * jax.random.normal(kg2, (C,), jnp.float32)
    b2 = 0.1 * jax.random.normal(kb2, (C,), jnp.float32)
    a1 = 0.25 * jnp.ones((C,), jnp.float32)    # PReLU default init, per-channel

    out = residual_block(x_nhwc, w1, g1, b1, a1, w2, g2, b2)
    out = jax.block_until_ready(out)

    ref = residual_block_ref(x_nhwc, w1, g1, b1, a1, w2, g2, b2)
    assert out.shape == (N, H, W, C)
    # Tolerance accounts for single-pass bf16 MXU conv matmuls vs f32 reference.
    assert jnp.allclose(out, ref, rtol=2e-2, atol=2e-2), (
        f"max abs err {jnp.max(jnp.abs(out - ref))}")

    print("KERNEL_OK")
</pallas_src>

<mosaic_0001>
module attributes {stable_mosaic.version = 11 : i64} {
  func.func @_residual_block_kernel(%arg0: memref<16x128xf32, #tpu.memory_space<vmem>>, %arg1: memref<3x128x128xbf16, #tpu.memory_space<vmem>>, %arg2: memref<3x128x128xbf16, #tpu.memory_space<vmem>>, %arg3: memref<128x128xf32, #tpu.memory_space<vmem>>, %arg4: memref<128x128xf32, #tpu.memory_space<vmem>>, %arg5: memref<1x128xf32, #tpu.memory_space<vmem>>, %arg6: memref<1x128xf32, #tpu.memory_space<vmem>>, %arg7: memref<1x128xf32, #tpu.memory_space<vmem>>, %arg8: memref<1x128xf32, #tpu.memory_space<vmem>>, %arg9: memref<1x128xf32, #tpu.memory_space<vmem>>, %arg10: memref<16x128xf32, #tpu.memory_space<vmem>>, %arg11: memref<24x128xbf16, #tpu.memory_space<vmem>>) attributes {dimension_semantics = [], scalar_prefetch = 0 : i64, scratch_operands = 1 : i64, tpu.core_type = #tpu.core_type<tc>} {
    %cst = arith.constant 0.000000e+00 : bf16
    %0 = vector.broadcast %cst : bf16 to vector<1x128xbf16>
    %c0 = arith.constant 0 : index
    %c0_0 = arith.constant 0 : index
    %1 = vector.load %arg11[%c0, %c0_0] : memref<24x128xbf16, #tpu.memory_space<vmem>>, vector<1x128xbf16>
    tpu.vector_store %arg11[%c0, %c0_0], %0 {strides = array<i32>} : memref<24x128xbf16, #tpu.memory_space<vmem>>, vector<1x128xbf16>,
    %c17 = arith.constant 17 : index
    %c0_1 = arith.constant 0 : index
    %2 = vector.load %arg11[%c17, %c0_1] : memref<24x128xbf16, #tpu.memory_space<vmem>>, vector<1x128xbf16>
    tpu.vector_store %arg11[%c17, %c0_1], %0 {strides = array<i32>} : memref<24x128xbf16, #tpu.memory_space<vmem>>, vector<1x128xbf16>,
    %c0_2 = arith.constant 0 : index
    %c0_3 = arith.constant 0 : index
    %3 = vector.load %arg0[%c0_2, %c0_3] : memref<16x128xf32, #tpu.memory_space<vmem>>, vector<16x128xf32>
    %4 = arith.truncf %3 : vector<16x128xf32> to vector<16x128xbf16>
    %c1 = arith.constant 1 : index
    %c0_4 = arith.constant 0 : index
    %5 = vector.load %arg11[%c1, %c0_4] : memref<24x128xbf16, #tpu.memory_space<vmem>>, vector<16x128xbf16>
    tpu.vector_store %arg11[%c1, %c0_4], %4 {strides = array<i32>} : memref<24x128xbf16, #tpu.memory_space<vmem>>, vector<16x128xbf16>,
    %c0_5 = arith.constant 0 : index
    %c0_6 = arith.constant 0 : index
    %6 = vector.load %arg11[%c0_5, %c0_6] : memref<24x128xbf16, #tpu.memory_space<vmem>>, vector<16x128xbf16>
    %c0_7 = arith.constant 0 : index
    %c0_8 = arith.constant 0 : index
    %c0_9 = arith.constant 0 : index
    %7 = vector.load %arg1[%c0_7, %c0_8, %c0_9] : memref<3x128x128xbf16, #tpu.memory_space<vmem>>, vector<1x128x128xbf16>
    %8 = vector.shape_cast %7 : vector<1x128x128xbf16> to vector<128x128xbf16>
    %cst_10 = arith.constant dense<0.000000e+00> : vector<16x128xf32>
    %9 = tpu.matmul %6, %8, %cst_10 {dimension_numbers = #tpu.dot_dimension_numbers<[1], [0], [0], [1], [0, 0, 1, 1], [], []>} : vector<16x128xbf16>, vector<128x128xbf16>, vector<16x128xf32> -> vector<16x128xf32>
    %c1_11 = arith.constant 1 : index
    %c0_12 = arith.constant 0 : index
    %10 = vector.load %arg11[%c1_11, %c0_12] : memref<24x128xbf16, #tpu.memory_space<vmem>>, vector<16x128xbf16>
    %c1_13 = arith.constant 1 : index
    %c0_14 = arith.constant 0 : index
    %c0_15 = arith.constant 0 : index
    %11 = vector.load %arg1[%c1_13, %c0_14, %c0_15] : memref<3x128x128xbf16, #tpu.memory_space<vmem>>, vector<1x128x128xbf16>
    %12 = vector.shape_cast %11 : vector<1x128x128xbf16> to vector<128x128xbf16>
    %cst_16 = arith.constant dense<0.000000e+00> : vector<16x128xf32>
    %13 = tpu.matmul %10, %12, %cst_16 {dimension_numbers = #tpu.dot_dimension_numbers<[1], [0], [0], [1], [0, 0, 1, 1], [], []>} : vector<16x128xbf16>, vector<128x128xbf16>, vector<16x128xf32> -> vector<16x128xf32>
    %14 = arith.addf %9, %13 : vector<16x128xf32>
    %c2 = arith.constant 2 : index
    %c0_17 = arith.constant 0 : index
    %15 = vector.load %arg11[%c2, %c0_17] : memref<24x128xbf16, #tpu.memory_space<vmem>>, vector<16x128xbf16>
    %c2_18 = arith.constant 2 : index
    %c0_19 = arith.constant 0 : index
    %c0_20 = arith.constant 0 : index
    %16 = vector.load %arg1[%c2_18, %c0_19, %c0_20] : memref<3x128x128xbf16, #tpu.memory_space<vmem>>, vector<1x128x128xbf16>
    %17 = vector.shape_cast %16 : vector<1x128x128xbf16> to vector<128x128xbf16>
    %cst_21 = arith.constant dense<0.000000e+00> : vector<16x128xf32>
    %18 = tpu.matmul %15, %17, %cst_21 {dimension_numbers = #tpu.dot_dimension_numbers<[1], [0], [0], [1], [0, 0, 1, 1], [], []>} : vector<16x128xbf16>, vector<128x128xbf16>, vector<16x128xf32> -> vector<16x128xf32>
    %19 = arith.addf %14, %18 : vector<16x128xf32>
    %cst_22 = arith.constant dense<0.000000e+00> : vector<128xf32>
    %20 = vector.multi_reduction <add>, %19, %cst_22 [0] : vector<16x128xf32> to vector<128xf32>
    %21 = vector.shape_cast %20 : vector<128xf32> to vector<1x128xf32>
    %c0_23 = arith.constant 0 : index
    %c0_24 = arith.constant 0 : index
    %22 = vector.load %arg3[%c0_23, %c0_24] : memref<128x128xf32, #tpu.memory_space<vmem>>, vector<128x128xf32>
    %cst_25 = arith.constant dense<0.000000e+00> : vector<1x128xf32>
    %23 = tpu.matmul %21, %22, %cst_25 {dimension_numbers = #tpu.dot_dimension_numbers<[1], [0], [0], [1], [0, 0, 1, 1], [], []>} : vector<1x128xf32>, vector<128x128xf32>, vector<1x128xf32> -> vector<1x128xf32>
    %cst_26 = arith.constant 0.001953125 : f32
    %24 = vector.broadcast %cst_26 : f32 to vector<1x128xf32>
    %25 = arith.mulf %23, %24 : vector<1x128xf32>
    %c0_27 = arith.constant 0 : index
    %c0_28 = arith.constant 0 : index
    %26 = vector.load %arg4[%c0_27, %c0_28] : memref<128x128xf32, #tpu.memory_space<vmem>>, vector<128x128xf32>
    %cst_29 = arith.constant dense<0.000000e+00> : vector<1x128xf32>
    %27 = tpu.matmul %25, %26, %cst_29 {dimension_numbers = #tpu.dot_dimension_numbers<[1], [0], [0], [1], [0, 0, 1, 1], [], []>} : vector<1x128xf32>, vector<128x128xf32>, vector<1x128xf32> -> vector<1x128xf32>
    %28 = vector.broadcast %27 : vector<1x128xf32> to vector<16x128xf32>
    %29 = arith.subf %19, %28 : vector<16x128xf32>
    %30 = arith.mulf %29, %29 : vector<16x128xf32>
    %cst_30 = arith.constant dense<0.000000e+00> : vector<128xf32>
    %31 = vector.multi_reduction <add>, %30, %cst_30 [0] : vector<16x128xf32> to vector<128xf32>
    %32 = vector.shape_cast %31 : vector<128xf32> to vector<1x128xf32>
    %c0_31 = arith.constant 0 : index
    %c0_32 = arith.constant 0 : index
    %33 = vector.load %arg3[%c0_31, %c0_32] : memref<128x128xf32, #tpu.memory_space<vmem>>, vector<128x128xf32>
    %cst_33 = arith.constant dense<0.000000e+00> : vector<1x128xf32>
    %34 = tpu.matmul %32, %33, %cst_33 {dimension_numbers = #tpu.dot_dimension_numbers<[1], [0], [0], [1], [0, 0, 1, 1], [], []>} : vector<1x128xf32>, vector<128x128xf32>, vector<1x128xf32> -> vector<1x128xf32>
    %cst_34 = arith.constant 0.001953125 : f32
    %35 = vector.broadcast %cst_34 : f32 to vector<1x128xf32>
    %36 = arith.mulf %34, %35 : vector<1x128xf32>
    %c0_35 = arith.constant 0 : index
    %c0_36 = arith.constant 0 : index
    %37 = vector.load %arg4[%c0_35, %c0_36] : memref<128x128xf32, #tpu.memory_space<vmem>>, vector<128x128xf32>
    %cst_37 = arith.constant dense<0.000000e+00> : vector<1x128xf32>
    %38 = tpu.matmul %36, %37, %cst_37 {dimension_numbers = #tpu.dot_dimension_numbers<[1], [0], [0], [1], [0, 0, 1, 1], [], []>} : vector<1x128xf32>, vector<128x128xf32>, vector<1x128xf32> -> vector<1x128xf32>
    %cst_38 = arith.constant 9.99999974E-6 : f32
    %39 = vector.broadcast %cst_38 : f32 to vector<1x128xf32>
    %40 = arith.addf %38, %39 : vector<1x128xf32>
    %41 = math.rsqrt %40 : vector<1x128xf32>
    %42 = vector.broadcast %41 : vector<1x128xf32> to vector<16x128xf32>
    %43 = arith.mulf %29, %42 : vector<16x128xf32>
    %c0_39 = arith.constant 0 : index
    %c0_40 = arith.constant 0 : index
    %44 = vector.load %arg5[%c0_39, %c0_40] : memref<1x128xf32, #tpu.memory_space<vmem>>, vector<1x128xf32>
    %45 = vector.broadcast %44 : vector<1x128xf32> to vector<16x128xf32>
    %46 = arith.mulf %43, %45 : vector<16x128xf32>
    %c0_41 = arith.constant 0 : index
    %c0_42 = arith.constant 0 : index
    %47 = vector.load %arg6[%c0_41, %c0_42] : memref<1x128xf32, #tpu.memory_space<vmem>>, vector<1x128xf32>
    %48 = vector.broadcast %47 : vector<1x128xf32> to vector<16x128xf32>
    %49 = arith.addf %46, %48 : vector<16x128xf32>
    %cst_43 = arith.constant 0.000000e+00 : f32
    %50 = vector.broadcast %cst_43 : f32 to vector<16x128xf32>
    %51 = arith.cmpf ogt, %49, %50 : vector<16x128xf32>
    %c0_44 = arith.constant 0 : index
    %c0_45 = arith.constant 0 : index
    %52 = vector.load %arg7[%c0_44, %c0_45] : memref<1x128xf32, #tpu.memory_space<vmem>>, vector<1x128xf32>
    %53 = vector.broadcast %52 : vector<1x128xf32> to vector<16x128xf32>
    %54 = arith.mulf %53, %49 : vector<16x128xf32>
    %55 = arith.select %51, %49, %54 : vector<16x128xi1>, vector<16x128xf32>
    %56 = arith.truncf %55 : vector<16x128xf32> to vector<16x128xbf16>
    %c1_46 = arith.constant 1 : index
    %c0_47 = arith.constant 0 : index
    %57 = vector.load %arg11[%c1_46, %c0_47] : memref<24x128xbf16, #tpu.memory_space<vmem>>, vector<16x128xbf16>
    tpu.vector_store %arg11[%c1_46, %c0_47], %56 {strides = array<i32>} : memref<24x128xbf16, #tpu.memory_space<vmem>>, vector<16x128xbf16>,
    %c0_48 = arith.constant 0 : index
    %c0_49 = arith.constant 0 : index
    %58 = vector.load %arg11[%c0_48, %c0_49] : memref<24x128xbf16, #tpu.memory_space<vmem>>, vector<16x128xbf16>
    %c0_50 = arith.constant 0 : index
    %c0_51 = arith.constant 0 : index
    %c0_52 = arith.constant 0 : index
    %59 = vector.load %arg2[%c0_50, %c0_51, %c0_52] : memref<3x128x128xbf16, #tpu.memory_space<vmem>>, vector<1x128x128xbf16>
    %60 = vector.shape_cast %59 : vector<1x128x128xbf16> to vector<128x128xbf16>
    %cst_53 = arith.constant dense<0.000000e+00> : vector<16x128xf32>
    %61 = tpu.matmul %58, %60, %cst_53 {dimension_numbers = #tpu.dot_dimension_numbers<[1], [0], [0], [1], [0, 0, 1, 1], [], []>} : vector<16x128xbf16>, vector<128x128xbf16>, vector<16x128xf32> -> vector<16x128xf32>
    %c1_54 = arith.constant 1 : index
    %c0_55 = arith.constant 0 : index
    %62 = vector.load %arg11[%c1_54, %c0_55] : memref<24x128xbf16, #tpu.memory_space<vmem>>, vector<16x128xbf16>
    %c1_56 = arith.constant 1 : index
    %c0_57 = arith.constant 0 : index
    %c0_58 = arith.constant 0 : index
    %63 = vector.load %arg2[%c1_56, %c0_57, %c0_58] : memref<3x128x128xbf16, #tpu.memory_space<vmem>>, vector<1x128x128xbf16>
    %64 = vector.shape_cast %63 : vector<1x128x128xbf16> to vector<128x128xbf16>
    %cst_59 = arith.constant dense<0.000000e+00> : vector<16x128xf32>
    %65 = tpu.matmul %62, %64, %cst_59 {dimension_numbers = #tpu.dot_dimension_numbers<[1], [0], [0], [1], [0, 0, 1, 1], [], []>} : vector<16x128xbf16>, vector<128x128xbf16>, vector<16x128xf32> -> vector<16x128xf32>
    %66 = arith.addf %61, %65 : vector<16x128xf32>
    %c2_60 = arith.constant 2 : index
    %c0_61 = arith.constant 0 : index
    %67 = vector.load %arg11[%c2_60, %c0_61] : memref<24x128xbf16, #tpu.memory_space<vmem>>, vector<16x128xbf16>
    %c2_62 = arith.constant 2 : index
    %c0_63 = arith.constant 0 : index
    %c0_64 = arith.constant 0 : index
    %68 = vector.load %arg2[%c2_62, %c0_63, %c0_64] : memref<3x128x128xbf16, #tpu.memory_space<vmem>>, vector<1x128x128xbf16>
    %69 = vector.shape_cast %68 : vector<1x128x128xbf16> to vector<128x128xbf16>
    %cst_65 = arith.constant dense<0.000000e+00> : vector<16x128xf32>
    %70 = tpu.matmul %67, %69, %cst_65 {dimension_numbers = #tpu.dot_dimension_numbers<[1], [0], [0], [1], [0, 0, 1, 1], [], []>} : vector<16x128xbf16>, vector<128x128xbf16>, vector<16x128xf32> -> vector<16x128xf32>
    %71 = arith.addf %66, %70 : vector<16x128xf32>
    %cst_66 = arith.constant dense<0.000000e+00> : vector<128xf32>
    %72 = vector.multi_reduction <add>, %71, %cst_66 [0] : vector<16x128xf32> to vector<128xf32>
    %73 = vector.shape_cast %72 : vector<128xf32> to vector<1x128xf32>
    %c0_67 = arith.constant 0 : index
    %c0_68 = arith.constant 0 : index
    %74 = vector.load %arg3[%c0_67, %c0_68] : memref<128x128xf32, #tpu.memory_space<vmem>>, vector<128x128xf32>
    %cst_69 = arith.constant dense<0.000000e+00> : vector<1x128xf32>
    %75 = tpu.matmul %73, %74, %cst_69 {dimension_numbers = #tpu.dot_dimension_numbers<[1], [0], [0], [1], [0, 0, 1, 1], [], []>} : vector<1x128xf32>, vector<128x128xf32>, vector<1x128xf32> -> vector<1x128xf32>
    %cst_70 = arith.constant 0.001953125 : f32
    %76 = vector.broadcast %cst_70 : f32 to vector<1x128xf32>
    %77 = arith.mulf %75, %76 : vector<1x128xf32>
    %c0_71 = arith.constant 0 : index
    %c0_72 = arith.constant 0 : index
    %78 = vector.load %arg4[%c0_71, %c0_72] : memref<128x128xf32, #tpu.memory_space<vmem>>, vector<128x128xf32>
    %cst_73 = arith.constant dense<0.000000e+00> : vector<1x128xf32>
    %79 = tpu.matmul %77, %78, %cst_73 {dimension_numbers = #tpu.dot_dimension_numbers<[1], [0], [0], [1], [0, 0, 1, 1], [], []>} : vector<1x128xf32>, vector<128x128xf32>, vector<1x128xf32> -> vector<1x128xf32>
    %80 = vector.broadcast %79 : vector<1x128xf32> to vector<16x128xf32>
    %81 = arith.subf %71, %80 : vector<16x128xf32>
    %82 = arith.mulf %81, %81 : vector<16x128xf32>
    %cst_74 = arith.constant dense<0.000000e+00> : vector<128xf32>
    %83 = vector.multi_reduction <add>, %82, %cst_74 [0] : vector<16x128xf32> to vector<128xf32>
    %84 = vector.shape_cast %83 : vector<128xf32> to vector<1x128xf32>
    %c0_75 = arith.constant 0 : index
    %c0_76 = arith.constant 0 : index
    %85 = vector.load %arg3[%c0_75, %c0_76] : memref<128x128xf32, #tpu.memory_space<vmem>>, vector<128x128xf32>
    %cst_77 = arith.constant dense<0.000000e+00> : vector<1x128xf32>
    %86 = tpu.matmul %84, %85, %cst_77 {dimension_numbers = #tpu.dot_dimension_numbers<[1], [0], [0], [1], [0, 0, 1, 1], [], []>} : vector<1x128xf32>, vector<128x128xf32>, vector<1x128xf32> -> vector<1x128xf32>
    %cst_78 = arith.constant 0.001953125 : f32
    %87 = vector.broadcast %cst_78 : f32 to vector<1x128xf32>
    %88 = arith.mulf %86, %87 : vector<1x128xf32>
    %c0_79 = arith.constant 0 : index
    %c0_80 = arith.constant 0 : index
    %89 = vector.load %arg4[%c0_79, %c0_80] : memref<128x128xf32, #tpu.memory_space<vmem>>, vector<128x128xf32>
    %cst_81 = arith.constant dense<0.000000e+00> : vector<1x128xf32>
    %90 = tpu.matmul %88, %89, %cst_81 {dimension_numbers = #tpu.dot_dimension_numbers<[1], [0], [0], [1], [0, 0, 1, 1], [], []>} : vector<1x128xf32>, vector<128x128xf32>, vector<1x128xf32> -> vector<1x128xf32>
    %cst_82 = arith.constant 9.99999974E-6 : f32
    %91 = vector.broadcast %cst_82 : f32 to vector<1x128xf32>
    %92 = arith.addf %90, %91 : vector<1x128xf32>
    %93 = math.rsqrt %92 : vector<1x128xf32>
    %94 = vector.broadcast %93 : vector<1x128xf32> to vector<16x128xf32>
    %95 = arith.mulf %81, %94 : vector<16x128xf32>
    %c0_83 = arith.constant 0 : index
    %c0_84 = arith.constant 0 : index
    %96 = vector.load %arg8[%c0_83, %c0_84] : memref<1x128xf32, #tpu.memory_space<vmem>>, vector<1x128xf32>
    %97 = vector.broadcast %96 : vector<1x128xf32> to vector<16x128xf32>
    %98 = arith.mulf %95, %97 : vector<16x128xf32>
    %c0_85 = arith.constant 0 : index
    %c0_86 = arith.constant 0 : index
    %99 = vector.load %arg9[%c0_85, %c0_86] : memref<1x128xf32, #tpu.memory_space<vmem>>, vector<1x128xf32>
    %100 = vector.broadcast %99 : vector<1x128xf32> to vector<16x128xf32>
    %101 = arith.addf %98, %100 : vector<16x128xf32>
    %102 = arith.addf %3, %101 : vector<16x128xf32>
    %c0_87 = arith.constant 0 : index
    %c0_88 = arith.constant 0 : index
    %103 = vector.load %arg10[%c0_87, %c0_88] : memref<16x128xf32, #tpu.memory_space<vmem>>, vector<16x128xf32>
    tpu.vector_store %arg10[%c0_87, %c0_88], %102 {strides = array<i32>} : memref<16x128xf32, #tpu.memory_space<vmem>>, vector<16x128xf32>,
    return
  }
}

</mosaic_0001>

<bundles_post_ra>
// kernel: tpu_custom_call.1
= control target key start
LH: loop header
LB: loop body
LE: loop exit
PB: predicated region body
PF: predicated region fallthrough
CT: control target
= control target key end

     0   :  { %15 = vsyncpa [#allocation4], 0  ;;  %s3219_s0 = inlined_call_operand.hbm [shape: f32[16,128], index: 0, kind: input, shape index: {}]   ;;  %s3220_s1 = inlined_call_operand.hbm [shape: bf16[3,128,128], index: 1, kind: input, shape index: {}]   ;;  %s3221_s2 = inlined_call_operand.hbm [shape: bf16[3,128,128], index: 2, kind: input, shape index: {}]   ;;  %s3222_s3 = inlined_call_operand.hbm [shape: f32[128,128], index: 3, kind: input, shape index: {}]   ;;  %s3223_s4 = inlined_call_operand.hbm [shape: f32[128,128], index: 4, kind: input, shape index: {}]   ;;  %s3224_s5 = inlined_call_operand.vmem [shape: f32[1,128], index: 5, kind: input, shape index: {}]   ;;  %s3225_s6 = inlined_call_operand.vmem [shape: f32[1,128], index: 6, kind: input, shape index: {}]   ;;  %s3226_s7 = inlined_call_operand.vmem [shape: f32[1,128], index: 7, kind: input, shape index: {}]   ;;  %s3227_s8 = inlined_call_operand.vmem [shape: f32[1,128], index: 8, kind: input, shape index: {}]   ;;  %s3228_s9 = inlined_call_operand.vmem [shape: f32[1,128], index: 9, kind: input, shape index: {}]   ;;  %s3229_s10 = inlined_call_operand.hbm [shape: f32[16,128], index: 10, kind: output, shape index: {}]  }
   0x1   :  { %16 = vsyncpa [#allocation7], 0 }
   0x2   :  { %17 = vsyncpa [#allocation10], 0 }
   0x3   :  { %18 = vsyncpa [#allocation5], 0  ;;  %s2747_s13 = smov [#allocation6]   ;;  %s2607_s17 = scalar_lea.hbm %s3220_s1, 3072 }
   0x4   :  { %s36_s14 = sshll.u32 %s2747_s13, 4  ;;  %p2608_p0 = scmp.ne.s32.totalorder %s3220_s1, %s2607_s17  ;;  %s37_s14 = int_to_ptr.vmem [resolvable:$true] %s36_s14 }
   0x5   :  { %p2611_p1 = scmp.lt.u32.totalorder %s2607_s17, %s3220_s1 }
   0x7   :  { %p2613_p2 = pnand %p2611_p1, %p2608_p0 }
   0x9   :  { %2616 = shalt.err (!%p2613_p2)
}
   0xa   :  { %s2617_s22 = scalar_lea.vmem %s37_s14, 3072  ;;  %p2622_p4 = scmp.lt.s32.totalorder %s37_s14, %s37_s14 }
   0xb   :  { %p2618_p3 = scmp.ne.s32.totalorder %s37_s14, %s2617_s22  ;;  %p2623_p5 = scmp.lt.s32.totalorder %s2617_s22, %s2617_s22 }
   0xd   :  { %p2624_p6 = por %p2623_p5, %p2622_p4 }
   0xf   :  { %p2625_p7 = pnand %p2624_p6, %p2618_p3 }
  0x11   :  { %2628 = shalt.err (!%p2625_p7)
}
  0x12   :  { %s2748_s23 = smov 64   ;;  %s2749_s24 = smov 4  }
  0x13   :  { %42 = dma.hbm_to_vmem [thread:$0]  %s3220_s1, 3072, %s37_s14, [#allocation7], %s2748_s23, %s2748_s23, %s2749_s24  }
  0x14   :  { %s2750_s27 = smov [#allocation9]   ;;  %s2751_s29 = smov [#allocation3]  }
  0x15   :  { %s60_s28 = sshll.u32 %s2750_s27, 4  ;;  %s24_s30 = sshll.u32 %s2751_s29, 4  ;;  %s61_s28 = int_to_ptr.vmem [resolvable:$true] %s60_s28  ;;  %s25_s30 = int_to_ptr.vmem [resolvable:$true] %s24_s30 }
  0x16   :  { %s2629_s13 = scalar_lea.hbm %s3222_s3, 2048 }
  0x17   :  { %p2630_p8 = scmp.ne.s32.totalorder %s3222_s3, %s2629_s13  ;;  %p2633_p9 = scmp.lt.u32.totalorder %s2629_s13, %s3222_s3 }
  0x19   :  { %p2635_p10 = pnand %p2633_p9, %p2630_p8 }
  0x1b   :  { %2638 = shalt.err (!%p2635_p10)
}
  0x1c   :  { %s2639_s1 = scalar_lea.vmem %s61_s28, 2048  ;;  %p2644_p12 = scmp.lt.s32.totalorder %s61_s28, %s61_s28 }
  0x1d   :  { %p2640_p11 = scmp.ne.s32.totalorder %s61_s28, %s2639_s1  ;;  %p2645_p13 = scmp.lt.s32.totalorder %s2639_s1, %s2639_s1 }
  0x1f   :  { %p2646_p0 = por %p2645_p13, %p2644_p12 }
  0x21   :  { %p2647_p1 = pnand %p2646_p0, %p2640_p11 }
  0x23   :  { %2650 = shalt.err (!%p2647_p1)
}
  0x24   :  { %s2752_s14 = smov 128   ;;  %s2753_s19 = smov 8  }
  0x25   :  { %66 = dma.hbm_to_vmem [thread:$0]  %s3222_s3, 2048, %s61_s28, [#allocation10], %s2752_s14, %s2752_s14, %s2753_s19  }
  0x26   :  { %s2651_s26 = scalar_lea.hbm %s3219_s0, 256 }
  0x27   :  { %p2652_p2 = scmp.ne.s32.totalorder %s3219_s0, %s2651_s26  ;;  %p2655_p3 = scmp.lt.u32.totalorder %s2651_s26, %s3219_s0 }
  0x29   :  { %p2657_p4 = pnand %p2655_p3, %p2652_p2 }
  0x2b   :  { %2660 = shalt.err (!%p2657_p4)
}
  0x2c   :  { %s2661_s13 = scalar_lea.vmem %s25_s30, 256  ;;  %p2666_p6 = scmp.lt.s32.totalorder %s25_s30, %s25_s30 }
  0x2d   :  { %p2662_p5 = scmp.ne.s32.totalorder %s25_s30, %s2661_s13  ;;  %p2667_p7 = scmp.lt.s32.totalorder %s2661_s13, %s2661_s13 }
  0x2f   :  { %p2668_p8 = por %p2667_p7, %p2666_p6 }
  0x31   :  { %p2669_p9 = pnand %p2668_p8, %p2662_p5 }
  0x33   :  { %2672 = shalt.err (!%p2669_p9)
}
  0x34   :  { %30 = dma.hbm_to_vmem [thread:$0]  %s3219_s0, 256, %s25_s30, [#allocation4], %s2752_s14, %s2752_s14, %s2753_s19  }
  0x35   :  { %s2754_s15 = smov [#allocation8]   ;;  %s2755_s17 = smov [#allocation11]  }
  0x36   :  { %s48_s16 = sshll.u32 %s2754_s15, 4  ;;  %s72_s18 = sshll.u32 %s2755_s17, 4  ;;  %s49_s16 = int_to_ptr.vmem [resolvable:$true] %s48_s16  ;;  %s73_s18 = int_to_ptr.vmem [resolvable:$true] %s72_s18 }
  0x37   :  { %s2673_s21 = scalar_lea.hbm %s3221_s2, 3072 }
  0x38   :  { %p2674_p10 = scmp.ne.s32.totalorder %s3221_s2, %s2673_s21  ;;  %p2677_p11 = scmp.lt.u32.totalorder %s2673_s21, %s3221_s2 }
  0x3a   :  { %p2679_p12 = pnand %p2677_p11, %p2674_p10 }
  0x3c   :  { %2682 = shalt.err (!%p2679_p12)
}
  0x3d   :  { %s2683_s0 = scalar_lea.vmem %s49_s16, 3072  ;;  %p2688_p0 = scmp.lt.s32.totalorder %s49_s16, %s49_s16 }
  0x3e   :  { %p2684_p13 = scmp.ne.s32.totalorder %s49_s16, %s2683_s0  ;;  %p2689_p1 = scmp.lt.s32.totalorder %s2683_s0, %s2683_s0 }
  0x40   :  { %p2690_p2 = por %p2689_p1, %p2688_p0 }
  0x42   :  { %p2691_p3 = pnand %p2690_p2, %p2684_p13 }
  0x44   :  { %2694 = shalt.err (!%p2691_p3)
}
  0x45   :  { %54 = dma.hbm_to_vmem [thread:$0]  %s3221_s2, 3072, %s49_s16, [#allocation7], %s2748_s23, %s2748_s23, %s2749_s24  }
  0x46   :  { %s2695_s13 = scalar_lea.hbm %s3223_s4, 2048 }
  0x47   :  { %p2696_p4 = scmp.ne.s32.totalorder %s3223_s4, %s2695_s13  ;;  %p2699_p5 = scmp.lt.u32.totalorder %s2695_s13, %s3223_s4 }
  0x49   :  { %p2701_p6 = pnand %p2699_p5, %p2696_p4 }
  0x4b   :  { %2704 = shalt.err (!%p2701_p6)
}
  0x4c   :  { %s2705_s1 = scalar_lea.vmem %s73_s18, 2048  ;;  %p2710_p8 = scmp.lt.s32.totalorder %s73_s18, %s73_s18 }
  0x4d   :  { %p2706_p7 = scmp.ne.s32.totalorder %s73_s18, %s2705_s1  ;;  %p2711_p9 = scmp.lt.s32.totalorder %s2705_s1, %s2705_s1 }
  0x4f   :  { %p2712_p10 = por %p2711_p9, %p2710_p8 }
  0x51   :  { %p2713_p11 = pnand %p2712_p10, %p2706_p7 }
  0x53   :  { %2716 = shalt.err (!%p2713_p11)
}
  0x54   :  { %78 = dma.hbm_to_vmem [thread:$0]  %s3223_s4, 2048, %s73_s18, [#allocation10], %s2752_s14, %s2752_s14, %s2753_s19  }
  0x55   :  { %2739 = dma.done.wait [#allocation4], 256  }
  0x56   :  { %2740 = vsyncadd [#allocation4], 4294967040 }
  0x57   :  { %2741 = dma.done.wait [#allocation7], 6144  }
  0x58   :  { %2742 = vsyncadd [#allocation7], 4294961152 }
  0x59   :  { %2743 = dma.done.wait [#allocation10], 4096  }
  0x5a   :  { %2744 = vsyncadd [#allocation10], 4294963200  ;;  %v2756_v0 = vmov 0.0   ;;  %vm2757_vm0 = vmmov 0   ;;  %v2758_v1 = vmov 0.0|0.0   ;;  %v2545_v2 = vld [vmem:[#allocation6 + $0x40] sm:$0xff]  }
  0x5b   :  { %1924 = vmatprep.subr.bf16.mxu0 %v2756_v0  ;;  %1940 = vmatprep.mubr.msk.bf16.mxu0 %vm2757_vm0, %v2756_v0  ;;  %vm106_vm1 = vsmask.f32 256  ;;  %vm105_vm2 = vcmask 1040384   ;;  %vm111_vm3 = vsmask.f32 7938  ;;  %v2546_v3 = vld [vmem:[#allocation6 + $0x48] sm:$0xff]  }
  0x5c   :  { %2016 = vmatprep.mubr.msk.f32.mxu1 %vm2757_vm0, %v2756_v0  ;;  %2324 = vmatprep.subr.bf16.mxu1 %v2758_v1  ;;  %vm2898_vm4 = vmand %vm105_vm2, %vm106_vm1  ;;  %v2547_v5 = vld [vmem:[#allocation6 + $0x50] sm:$0xff]   ;;  %vm124_vm6 = vsmask.f32 4368  ;;  %v108_v6 = vld [vmem:[#allocation2] sm:$0x1]  ;;  %vm146_vm7 = vcmask 1043456  }
  0x5d   :  { %1925 = vmatpush3.bf16.msra.mxu0 %v2545_v2  ;;  %vm112_vm5 = vmand %vm105_vm2, %vm111_vm3  ;;  %v113_v7 = vld [vmem:[#allocation2 + $0x8] sm:$0x1]  ;;  %v116_v8 = vld [vmem:[#allocation3] sm:$0xff]  ;;  %v109_v10 = vsel %vm2898_vm4, 0, %v108_v6  ;;  %vm201_vm10 = vsmask.f32 7424 }
  0x5e   :  { %1926 = vmatprep.subr.bf16.mxu0 %v2756_v0  ;;  %v2548_v9 = vld [vmem:[#allocation6 + $0x58] sm:$0xff]   ;;  %v114_v11 = vsel %vm112_vm5, 0, %v113_v7  ;;  %v1730_v13 = vpack.c.bf16 %v116_v8, %v116_v8  ;;  %110 = vst [vmem:[#allocation2] sm:$0x1] %v109_v10  ;;  %vm2909_vm8 = vmor %vm106_vm1, %vm124_vm6  ;;  %v2549_v21 = vld [vmem:[#allocation6 + $0x60] sm:$0xff]   ;;  %vm420_vm11 = vcmask 1046528  }
  0x5f   :  { %v117_v12 = vld [vmem:[#allocation3 + $0x8] sm:$0xff]  ;;  %115 = vst [vmem:[#allocation2 + $0x8] sm:$0x1] %v114_v11  ;;  %vm2915_vm9 = vmand %vm146_vm7, %vm111_vm3  ;;  %v2550_v30 = vld [vmem:[#allocation6 + $0x68] sm:$0xff]   ;;  %s2759_s25 = smov [#allocation12]  }
  0x60   :  { %v1731_v14 = vpack.c.bf16 %v117_v12, %v117_v12  ;;  %v127_v15 = vshrl.u32 %v1730_v13, 16  ;;  %v130_v16 = vshll.u32 %v1730_v13, 16  ;;  %v2551_v34 = vld [vmem:[#allocation6 + $0x70] sm:$0xff]   ;;  %v2552_v35 = vld [vmem:[#allocation6 + $0x78] sm:$0xff]   ;;  %v523_v43 = vld [vmem:[#allocation9] sm:$0xff]  ;;  %s1651_s26 = sshll.u32 %s2759_s25, 4  ;;  %s1652_s26 = int_to_ptr.vmem [resolvable:$true] %s1651_s26 }
  0x61   :  { %1927 = vmatpush3.bf16.msra.mxu0 %v2546_v3  ;;  %v524_v44 = vld [vmem:[#allocation9 + $0x8] sm:$0xff]  ;;  %v525_v45 = vld [vmem:[#allocation9 + $0x10] sm:$0xff]  ;;  %v526_v47 = vld [vmem:[#allocation9 + $0x18] sm:$0xff]  ;;  %p2722_p13 = scmp.lt.s32.totalorder %s1652_s26, %s1652_s26 }
  0x62   :  { %1928 = vmatprep.subr.bf16.mxu0 %v2756_v0  ;;  %v135_v17 = vshrl.u32 %v1731_v14, 16  ;;  %v138_v18 = vshll.u32 %v1731_v14, 16  ;;  %v129_v20 = vrot.slane %v127_v15, 7  ;;  %v2937_v46 = vpack.c.bf16 %v524_v44, %v523_v43  ;;  %v2555_v50 = vld [vmem:[#allocation6] sm:$0xff]   ;;  %v528_v52 = vld [vmem:[#allocation9 + $0x28] sm:$0xff]  ;;  %v529_v57 = vld [vmem:[#allocation9 + $0x30] sm:$0xff] }
  0x63   :  { %v527_v51 = vld [vmem:[#allocation9 + $0x20] sm:$0xff]  ;;  %v2941_v53 = vpack.c.bf16 %v526_v47, %v525_v45  ;;  %v2556_v56 = vld [vmem:[#allocation6 + $0x8] sm:$0xff]   ;;  %v530_v58 = vld [vmem:[#allocation9 + $0x38] sm:$0xff] }
  0x64   :  { %v137_v22 = vrot.slane %v135_v17, 7  ;;  %v132_v23 = vor.u32 %v130_v16, %v129_v20  ;;  %v133_v24 = vrot.slane %v129_v20, 4  ;;  %2326 = vmatpush3.bf16.msra.mxu1 %v2937_v46  ;;  %v2946_v59 = vpack.c.bf16 %v528_v52, %v527_v51  ;;  %v2557_v60 = vld [vmem:[#allocation6 + $0x10] sm:$0xff]   ;;  %v2558_v62 = vld [vmem:[#allocation6 + $0x18] sm:$0xff]   ;;  %v2559_v63 = vld [vmem:[#allocation6 + $0x20] sm:$0xff]  }
  0x65   :  { %1929 = vmatpush3.bf16.msra.mxu0 %v2547_v5  ;;  %v148_v28 = vld [vmem:[#allocation2] sm:$0xf]  ;;  %2327 = vmatprep.subr.bf16.mxu1 %v2758_v1  ;;  %v2953_v61 = vpack.c.bf16 %v530_v58, %v529_v57  ;;  %v2560_v2 = vld [vmem:[#allocation6 + $0x28] sm:$0xff]   ;;  %v2561_v3 = vld [vmem:[#allocation6 + $0x30] sm:$0xff]  }
  0x66   :  { %1930 = vmatprep.subr.bf16.mxu0 %v2756_v0  ;;  %v140_v26 = vor.u32 %v138_v18, %v137_v22  ;;  %v142_v27 = vrot.slane %v137_v22, 4  ;;  %v152_v29 = vld [vmem:[#allocation2 + $0x8] sm:$0x1]  ;;  %v149_v32 = vsel %vm2915_vm9, %v132_v23, %v148_v28  ;;  %v2562_v5 = vld [vmem:[#allocation6 + $0x38] sm:$0xff]   ;;  %v2564_v7 = vld [vmem:[#allocation6 + $0x80] sm:$0xff]  }
  0x67   :  { %150 = vst [vmem:[#allocation2] sm:$0xf] %v149_v32  ;;  %v2565_v8 = vld [vmem:[#allocation6 + $0x88] sm:$0xff]   ;;  %v2567_v10 = vld [vmem:[#allocation6 + $0x98] sm:$0xff]   ;;  %v2568_v11 = vld [vmem:[#allocation6 + $0xa0] sm:$0xff]  }
  0x68   :  { %v141_v31 = vsel %vm2909_vm8, %v133_v24, %v140_v26  ;;  %v153_v33 = vsel %vm2898_vm4, %v142_v27, %v152_v29  ;;  %2329 = vmatpush3.bf16.msra.mxu1 %v2941_v53  ;;  %v2569_v12 = vld [vmem:[#allocation6 + $0xa8] sm:$0xff]   ;;  %v2570_v14 = vld [vmem:[#allocation6 + $0xb0] sm:$0xff]   ;;  %v2571_v16 = vld [vmem:[#allocation6 + $0xb8] sm:$0xff]  }
  0x69   :  { %1931 = vmatpush3.bf16.msra.mxu0 %v2548_v9  ;;  %151 = vst [vmem:[#allocation2 + $0x4] sm:$0xf] %v141_v31  ;;  %154 = vst [vmem:[#allocation2 + $0x8] sm:$0x1] %v153_v33  ;;  %2330 = vmatprep.subr.bf16.mxu1 %v2758_v1  ;;  %v2566_v9 = vld [vmem:[#allocation6 + $0x90] sm:$0xff]   ;;  %v532_v22 = vld [vmem:[#allocation9 + $0x48] sm:$0xff] }
  0x6a   :  { %1932 = vmatprep.subr.bf16.mxu0 %v2756_v0  ;;  %v533_v24 = vld [vmem:[#allocation9 + $0x50] sm:$0xff]  ;;  %v534_v26 = vld [vmem:[#allocation9 + $0x58] sm:$0xff]  ;;  %v535_v28 = vld [vmem:[#allocation9 + $0x60] sm:$0xff] }
  0x6b   :  { %v2984_v27 = vpack.c.bf16 %v534_v26, %v533_v24  ;;  %v536_v29 = vld [vmem:[#allocation9 + $0x68] sm:$0xff]  ;;  %v537_v31 = vld [vmem:[#allocation9 + $0x70] sm:$0xff]  ;;  %v538_v32 = vld [vmem:[#allocation9 + $0x78] sm:$0xff] }
  0x6c   :  { %2332 = vmatpush3.bf16.msra.mxu1 %v2946_v59  ;;  %v2992_v33 = vpack.c.bf16 %v538_v32, %v537_v31  ;;  %v616_v44 = vld [vmem:[#allocation11 + $0x30] sm:$0xff]  ;;  %v617_v45 = vld [vmem:[#allocation11 + $0x38] sm:$0xff] }
  0x6d   :  { %1933 = vmatpush3.bf16.msra.mxu0 %v2549_v21  ;;  %2333 = vmatprep.subr.bf16.mxu1 %v2758_v1  ;;  %v531_v21 = vld [vmem:[#allocation9 + $0x40] sm:$0xff]  ;;  %v3008_v47 = vpack.c.bf16 %v617_v45, %v616_v44  ;;  %v620_v51 = vld [vmem:[#allocation11 + $0x50] sm:$0xff]  ;;  %v621_v52 = vld [vmem:[#allocation11 + $0x58] sm:$0xff] }
  0x6e   :  { %1934 = vmatprep.subr.bf16.mxu0 %v2756_v0  ;;  %v2927_v36 = vld [vmem:[#allocation2] sm:$0xf]  ;;  %v2980_v23 = vpack.c.bf16 %v532_v22, %v531_v21 }
  0x6f   :  { %v399_v13 = vld [vmem:[#allocation2] sm:$0xe] }
  0x70   :  { %v2929_v37 = vld [vmem:[#allocation2 + $0x4] sm:$0xf]  ;;  %v2934_v39 = vld [vmem:[#allocation2 + $0x8] ss:$0 sps:$4 sm:$0x11]   ;;  %2335 = vmatpush3.bf16.msra.mxu1 %v2953_v61 }
  0x71   :  { %1935 = vmatpush3.bf16.msra.mxu0 %v2550_v30  ;;  %v1667_v38 = vcombine.low %v2927_v36, %v2929_v37  ;;  %v210_v42 = vshll.u32 %v2934_v39, 16  ;;  %2336 = vmatprep.subr.bf16.mxu1 %v2758_v1  ;;  %v2563_v6 = vld [vmem:[#allocation2] sm:$0xff]   ;;  %v1686_v15 = vcombine.low %v399_v13, %v2929_v37  ;;  %v422_v18 = vrot.slane %v2934_v39, 1  ;;  %v613_v39 = vld [vmem:[#allocation11 + $0x18] sm:$0xff] }
  0x72   :  { %1936 = vmatprep.subr.bf16.mxu0 %v2756_v0  ;;  %v2988_v30 = vpack.c.bf16 %v536_v29, %v535_v28 }
  0x73   :  { %v203_v40 = vshrl.u32 %v1667_v38, 16  ;;  %v205_v41 = vshll.u32 %v1667_v38, 16  ;;  %v212_v49 = vrot.slane %v210_v42, 1  ;;  %v421_v17 = vrot.slane %v1686_v15, 1  ;;  %v612_v38 = vld [vmem:[#allocation11 + $0x10] sm:$0xff]  ;;  %v615_v42 = vld [vmem:[#allocation11 + $0x28] sm:$0xff] }
  0x74   :  { %2338 = vmatpush3.bf16.msra.mxu1 %v2980_v23 }
  0x75   :  { %1937 = vmatpush3.bf16.msra.mxu0 %v2551_v34  ;;  %v207_v48 = vrot.slane %v205_v41, 1  ;;  %v423_v20 = vsel %vm420_vm11, %v421_v17, %v422_v18  ;;  %2339 = vmatprep.subr.bf16.mxu1 %v2758_v1  ;;  %v610_v34 = vld [vmem:[#allocation11] sm:$0xff] }
  0x76   :  { %1938 = vmatprep.subr.bf16.mxu0 %v2756_v0  ;;  %v614_v41 = vld [vmem:[#allocation11 + $0x20] sm:$0xff] }
  0x77   :  { %v208_v54 = vor.u32 %v207_v48, %v203_v40  ;;  %v3000_v40 = vpack.c.bf16 %v613_v39, %v612_v38  ;;  %v3004_v43 = vpack.c.bf16 %v615_v42, %v614_v41  ;;  %v618_v48 = vld [vmem:[#allocation11 + $0x40] sm:$0xff] }
  0x78   :  { %2341 = vmatpush3.bf16.msra.mxu1 %v2984_v27 }
  0x79   :  { %1939 = vmatpush3.bf16.msra.mxu0 %v2552_v35  ;;  %v213_v55 = vsel %vm201_vm10, %v208_v54, %v212_v49  ;;  %2342 = vmatprep.subr.bf16.mxu1 %v2758_v1  ;;  %v611_v35 = vld [vmem:[#allocation11 + $0x8] sm:$0xff]  ;;  %v3016_v54 = vpack.c.bf16 %v621_v52, %v620_v51  ;;  %v2575_v51 = vld [vmem:[#allocation8 + $0x50] sm:$0xff]   ;;  %v2576_v52 = vld [vmem:[#allocation8 + $0x58] sm:$0xff]  }
  0x7a   :  { %1944 = vmatprep.subr.bf16.mxu0 %v2756_v0  ;;  %v2996_v37 = vpack.c.bf16 %v611_v35, %v610_v34  ;;  %v619_v49 = vld [vmem:[#allocation11 + $0x48] sm:$0xff] }
  0x7c   :  { %1941 = vmatmul.mubr.bf16.vlgmr.msra.gmra.mrb[0].mxu0 %v213_v55  ;;  %2344 = vmatpush3.bf16.msra.mxu1 %v2988_v30  ;;  %v622_v55 = vld [vmem:[#allocation11 + $0x60] sm:$0xff] }
  0x7d   :  { %1945 = vmatpush3.bf16.msra.mxu0 %v2555_v50  ;;  %1960 = vmatprep.mubr.msk.bf16.mxu0 %vm2757_vm0, %v2756_v0  ;;  %v3012_v50 = vpack.c.bf16 %v619_v49, %v618_v48  ;;  %v2573_v48 = vld [vmem:[#allocation8 + $0x40] sm:$0xff]   ;;  %v2574_v49 = vld [vmem:[#allocation8 + $0x48] sm:$0xff]  }
  0x7e   :  { %1946 = vmatprep.subr.bf16.mxu0 %v2756_v0  ;;  %2345 = vmatprep.subr.bf16.mxu1 %v2758_v1 }
  0x80   :  { %2347 = vmatpush3.bf16.msra.mxu1 %v2992_v33 }
  0x81   :  { %1947 = vmatpush3.bf16.msra.mxu0 %v2556_v56  ;;  %2348 = vmatprep.subr.bf16.mxu1 %v2758_v1  ;;  %v623_v56 = vld [vmem:[#allocation11 + $0x68] sm:$0xff] }
  0x82   :  { %1948 = vmatprep.subr.bf16.mxu0 %v2756_v0  ;;  %v3020_v57 = vpack.c.bf16 %v623_v56, %v622_v55  ;;  %v2577_v55 = vld [vmem:[#allocation8 + $0x60] sm:$0xff]   ;;  %v2578_v56 = vld [vmem:[#allocation8 + $0x68] sm:$0xff]  }
  0x85   :  { %1949 = vmatpush3.bf16.msra.mxu0 %v2557_v60 }
  0x86   :  { %1950 = vmatprep.subr.bf16.mxu0 %v2756_v0 }
  0x89   :  { %1951 = vmatpush3.bf16.msra.mxu0 %v2558_v62 }
  0x8a   :  { %1952 = vmatprep.subr.bf16.mxu0 %v2756_v0 }
  0x8d   :  { %1953 = vmatpush3.bf16.msra.mxu0 %v2559_v63 }
  0x8e   :  { %1954 = vmatprep.subr.bf16.mxu0 %v2756_v0 }
  0x91   :  { %1955 = vmatpush3.bf16.msra.mxu0 %v2560_v2 }
  0x92   :  { %1956 = vmatprep.subr.bf16.mxu0 %v2756_v0 }
  0x95   :  { %1957 = vmatpush3.bf16.msra.mxu0 %v2561_v3 }
  0x96   :  { %1958 = vmatprep.subr.bf16.mxu0 %v2756_v0 }
  0x99   :  { %1959 = vmatpush3.bf16.msra.mxu0 %v2562_v5 }
  0x9a   :  { %1964 = vmatprep.subr.bf16.mxu0 %v2756_v0 }
  0x9c   :  { %1961 = vmatmul.mubr.bf16.vlgmr.msra.gmra.mrb[0].mxu0 %v2563_v6 }
  0x9d   :  { %1965 = vmatpush3.bf16.msra.mxu0 %v2564_v7  ;;  %1980 = vmatprep.mubr.msk.bf16.mxu0 %vm2757_vm0, %v2756_v0 }
  0x9e   :  { %1966 = vmatprep.subr.bf16.mxu0 %v2756_v0 }
  0xa1   :  { %1967 = vmatpush3.bf16.msra.mxu0 %v2565_v8 }
  0xa2   :  { %1968 = vmatprep.subr.bf16.mxu0 %v2756_v0 }
  0xa5   :  { %1969 = vmatpush3.bf16.msra.mxu0 %v2566_v9 }
  0xa6   :  { %1970 = vmatprep.subr.bf16.mxu0 %v2756_v0 }
  0xa9   :  { %1971 = vmatpush3.bf16.msra.mxu0 %v2567_v10  ;;  %v624_v10 = vld [vmem:[#allocation11 + $0x70] sm:$0xff] }
  0xaa   :  { %1972 = vmatprep.subr.bf16.mxu0 %v2756_v0 }
  0xad   :  { %1973 = vmatpush3.bf16.msra.mxu0 %v2568_v11  ;;  %v625_v11 = vld [vmem:[#allocation11 + $0x78] sm:$0xff] }
  0xae   :  { %1974 = vmatprep.subr.bf16.mxu0 %v2756_v0 }
  0xb1   :  { %1975 = vmatpush3.bf16.msra.mxu0 %v2569_v12  ;;  %v3040_v12 = vpack.c.bf16 %v625_v11, %v624_v10 }
  0xb2   :  { %1976 = vmatprep.subr.bf16.mxu0 %v2756_v0 }
  0xb5   :  { %1977 = vmatpush3.bf16.msra.mxu0 %v2570_v14 }
  0xb6   :  { %1978 = vmatprep.subr.bf16.mxu0 %v2756_v0 }
  0xb9   :  { %1979 = vmatpush3.bf16.msra.mxu0 %v2571_v16  ;;  %v696_v16 = vlaneseq }
  0xba   :  { %2396 = vmatprep.subr.bf16.mxu0 %v2758_v1 }
  0xbb   :  { %v697_v17 = vshrl.u32 %v696_v16, 7 }
  0xbc   :  { %1981 = vmatmul.mubr.bf16.vlgmr.msra.gmra.mrb[0].mxu0 %v423_v20 }
  0xbd   :  { %2121 = vmatprep.mubr.msk.f32.mxu0 %vm2757_vm0, %v2756_v0  ;;  %2398 = vmatpush3.bf16.msra.mxu0 %v2996_v37  ;;  %v3064_v18 = vsub.s32 0, %v697_v17 }
  0xbe   :  { %2399 = vmatprep.subr.bf16.mxu0 %v2758_v1 }
  0xc1   :  { %2401 = vmatpush3.bf16.msra.mxu0 %v3000_v40 }
  0xc2   :  { %2402 = vmatprep.subr.bf16.mxu0 %v2758_v1 }
  0xc5   :  { %2404 = vmatpush3.bf16.msra.mxu0 %v3004_v43 }
  0xc6   :  { %2405 = vmatprep.subr.bf16.mxu0 %v2758_v1 }
  0xc9   :  { %2407 = vmatpush3.bf16.msra.mxu0 %v3008_v47 }
  0xca   :  { %2408 = vmatprep.subr.bf16.mxu0 %v2758_v1 }
  0xcd   :  { %2410 = vmatpush3.bf16.msra.mxu0 %v3012_v50 }
  0xce   :  { %2411 = vmatprep.subr.bf16.mxu0 %v2758_v1 }
  0xd1   :  { %2413 = vmatpush3.bf16.msra.mxu0 %v3016_v54 }
  0xd2   :  { %2414 = vmatprep.subr.bf16.mxu0 %v2758_v1 }
  0xd5   :  { %2416 = vmatpush3.bf16.msra.mxu0 %v3020_v57 }
  0xd6   :  { %2417 = vmatprep.subr.bf16.mxu0 %v2758_v1 }
  0xd9   :  { %2419 = vmatpush3.bf16.msra.mxu0 %v3040_v12 }
  0xda   :  { %2420 = vmatprep.subr.bf16.mxu0 %v2758_v1 }
 0x18f   :  { %v507_v58 = vpop.f32.mrb[0].mxu0 }
 0x190   :  { %v1982_v60 = vpop.f32.mrb[1].mxu0 }
 0x191   :  { %v510_v62 = vpop.f32.mrb[2].mxu0  ;;  %v2580_v60 = vld [vmem:[#allocation8 + $0x78] sm:$0xff]  }
 0x192   :  { %v516_v63 = vadd.f32 %v510_v62, %v507_v58  ;;  %v1983_v2 = vpop.f32.mrb[3].mxu0 }
 0x194   :  { %v517_v3 = vrot.slane %v516_v63, 4 }
 0x196   :  { %v518_v5 = vadd.f32 %v517_v3, %v516_v63 }
 0x198   :  { %v519_v6 = vrot.slane %v518_v5, 2 }
 0x19a   :  { %v520_v7 = vadd.f32 %v519_v6, %v518_v5  ;;  %v1695_v6 = vld [vmem:[%s3224_s5] ss:$0 sm:$0xff] }
 0x19c   :  { %v521_v8 = vrot.slane %v520_v7, 1 }
 0x19e   :  { %v522_v9 = vadd.f32 %v521_v8, %v520_v7 }
 0x1a0   :  { %2017 = vmatmul.mubr.f32.vlgmr.msra.gmra.mrb[0].mxu1 %v522_v9  ;;  %v1696_v9 = vld [vmem:[%s3225_s6] ss:$0 sm:$0xff] }
 0x1a1   :  { %2350 = vmatpush3.bf16.msra.mxu1 %v2996_v37  ;;  %2051 = vmatprep.mubr.msk.f32.mxu1 %vm2757_vm0, %v2756_v0 }
 0x1a2   :  { %2351 = vmatprep.subr.bf16.mxu1 %v2758_v1 }
 0x1a5   :  { %2353 = vmatpush3.bf16.msra.mxu1 %v3000_v40 }
 0x1a6   :  { %2354 = vmatprep.subr.bf16.mxu1 %v2758_v1 }
 0x1a9   :  { %2356 = vmatpush3.bf16.msra.mxu1 %v3004_v43 }
 0x1aa   :  { %2357 = vmatprep.subr.bf16.mxu1 %v2758_v1 }
 0x1ad   :  { %2359 = vmatpush3.bf16.msra.mxu1 %v3008_v47 }
 0x1ae   :  { %2360 = vmatprep.subr.bf16.mxu1 %v2758_v1 }
 0x1b1   :  { %2362 = vmatpush3.bf16.msra.mxu1 %v3012_v50 }
 0x1b2   :  { %2363 = vmatprep.subr.bf16.mxu1 %v2758_v1 }
 0x1b5   :  { %2365 = vmatpush3.bf16.msra.mxu1 %v3016_v54 }
 0x1b6   :  { %2366 = vmatprep.subr.bf16.mxu1 %v2758_v1 }
 0x1b9   :  { %2368 = vmatpush3.bf16.msra.mxu1 %v3020_v57 }
 0x1ba   :  { %2369 = vmatprep.subr.bf16.mxu1 %v2758_v1 }
 0x1bd   :  { %2371 = vmatpush3.bf16.msra.mxu1 %v3040_v12 }
 0x1be   :  { %2372 = vmatprep.subr.bf16.mxu1 %v2758_v1 }
 0x273   :  { %v605_v13 = vpop.f32.mrb[0].mxu1 }
 0x274   :  { %v609_v14 = vmul.f32 0.001953125, %v605_v13  ;;  %v2018_v15 = vpop.f32.mrb[1].mxu1  ;;  %v1697_v13 = vld [vmem:[%s3226_s7] ss:$0 sm:$0xff] }
 0x276   :  { %2052 = vmatmul.mubr.f32.vlgmr.msra.gmra.mrb[2].mxu1 %v609_v14 }
 0x277   :  { %2374 = vmatpush3.bf16.msra.mxu1 %v2937_v46  ;;  %2086 = vmatprep.mubr.msk.f32.mxu1 %vm2757_vm0, %v2756_v0 }
 0x278   :  { %2375 = vmatprep.subr.bf16.mxu1 %v2758_v1 }
 0x27b   :  { %2377 = vmatpush3.bf16.msra.mxu1 %v2941_v53 }
 0x27c   :  { %2378 = vmatprep.subr.bf16.mxu1 %v2758_v1 }
 0x27f   :  { %2380 = vmatpush3.bf16.msra.mxu1 %v2946_v59 }
 0x280   :  { %2381 = vmatprep.subr.bf16.mxu1 %v2758_v1 }
 0x283   :  { %2383 = vmatpush3.bf16.msra.mxu1 %v2953_v61 }
 0x284   :  { %2384 = vmatprep.subr.bf16.mxu1 %v2758_v1 }
 0x287   :  { %2386 = vmatpush3.bf16.msra.mxu1 %v2980_v23 }
 0x288   :  { %2387 = vmatprep.subr.bf16.mxu1 %v2758_v1 }
 0x28b   :  { %2389 = vmatpush3.bf16.msra.mxu1 %v2984_v27 }
 0x28c   :  { %2390 = vmatprep.subr.bf16.mxu1 %v2758_v1 }
 0x28f   :  { %2392 = vmatpush3.bf16.msra.mxu1 %v2988_v30 }
 0x290   :  { %2393 = vmatprep.subr.bf16.mxu1 %v2758_v1 }
 0x293   :  { %2395 = vmatpush3.bf16.msra.mxu1 %v2992_v33 }
 0x294   :  { %2124 = vmatprep.subr.bf16.mxu1 %v2756_v0 }
 0x349   :  { %v692_v20 = vpop.f32.mrb[2].mxu1 }
 0x34a   :  { %v699_v21 = vrot.slane %v692_v20, %v3064_v18  ;;  %v2053_v22 = vpop.f32.mrb[3].mxu1 }
 0x34c   :  { %v3067_v24 = vsub.f32 %v507_v58, %v699_v21  ;;  %v3069_v26 = vsub.f32 %v510_v62, %v699_v21  ;;  %v2579_v58 = vld [vmem:[#allocation8 + $0x70] sm:$0xff]  }
 0x34e   :  { %v702_v28 = vmul.f32 %v3067_v24, %v3067_v24  ;;  %v703_v29 = vmul.f32 %v3069_v26, %v3069_v26 }
 0x350   :  { %v704_v31 = vadd.f32 %v703_v29, %v702_v28 }
 0x352   :  { %v705_v32 = vrot.slane %v704_v31, 4 }
 0x354   :  { %v706_v34 = vadd.f32 %v705_v32, %v704_v31 }
 0x356   :  { %v707_v35 = vrot.slane %v706_v34, 2 }
 0x358   :  { %v708_v38 = vadd.f32 %v707_v35, %v706_v34  ;;  %v919_v35 = vld [vmem:[#allocation2 + $0x8] sm:$0x1] }
 0x35a   :  { %v709_v39 = vrot.slane %v708_v38, 1 }
 0x35c   :  { %v710_v41 = vadd.f32 %v709_v39, %v708_v38 }
 0x35e   :  { %2087 = vmatmul.mubr.f32.vlgmr.msra.gmra.mrb[4].mxu1 %v710_v41 }
 0x35f   :  { %2140 = vmatprep.mubr.msk.bf16.mxu1 %vm2757_vm0, %v2756_v0  ;;  %2125 = vmatpush3.bf16.msra.mxu1 %v2573_v48 }
 0x360   :  { %2126 = vmatprep.subr.bf16.mxu1 %v2756_v0 }
 0x363   :  { %2127 = vmatpush3.bf16.msra.mxu1 %v2574_v49 }
 0x364   :  { %2128 = vmatprep.subr.bf16.mxu1 %v2756_v0 }
 0x367   :  { %2129 = vmatpush3.bf16.msra.mxu1 %v2575_v51 }
 0x368   :  { %2130 = vmatprep.subr.bf16.mxu1 %v2756_v0 }
 0x36b   :  { %2131 = vmatpush3.bf16.msra.mxu1 %v2576_v52 }
 0x36c   :  { %2132 = vmatprep.subr.bf16.mxu1 %v2756_v0 }
 0x36f   :  { %2133 = vmatpush3.bf16.msra.mxu1 %v2577_v55 }
 0x370   :  { %2134 = vmatprep.subr.bf16.mxu1 %v2756_v0 }
 0x373   :  { %2135 = vmatpush3.bf16.msra.mxu1 %v2578_v56 }
 0x374   :  { %2136 = vmatprep.subr.bf16.mxu1 %v2756_v0 }
 0x377   :  { %2137 = vmatpush3.bf16.msra.mxu1 %v2579_v58 }
 0x378   :  { %2138 = vmatprep.subr.bf16.mxu1 %v2756_v0 }
 0x37b   :  { %2139 = vmatpush3.bf16.msra.mxu1 %v2580_v60 }
 0x37c   :  { %2144 = vmatprep.subr.bf16.mxu1 %v2756_v0 }
 0x431   :  { %v777_v42 = vpop.f32.mrb[4].mxu1 }
 0x432   :  { %v781_v44 = vmul.f32 0.001953125, %v777_v42  ;;  %v2088_v45 = vpop.f32.mrb[5].mxu1 }
 0x434   :  { %2122 = vmatmul.mubr.f32.vlgmr.msra.gmra.mrb[4].mxu0 %v781_v44 }
 0x435   :  { %2422 = vmatpush3.bf16.msra.mxu0 %v2937_v46  ;;  %2216 = vmatprep.mubr.msk.f32.mxu0 %vm2757_vm0, %v2756_v0 }
 0x436   :  { %2423 = vmatprep.subr.bf16.mxu0 %v2758_v1 }
 0x439   :  { %2425 = vmatpush3.bf16.msra.mxu0 %v2941_v53 }
 0x43a   :  { %2426 = vmatprep.subr.bf16.mxu0 %v2758_v1 }
 0x43d   :  { %2428 = vmatpush3.bf16.msra.mxu0 %v2946_v59 }
 0x43e   :  { %2429 = vmatprep.subr.bf16.mxu0 %v2758_v1 }
 0x441   :  { %2431 = vmatpush3.bf16.msra.mxu0 %v2953_v61 }
 0x442   :  { %2432 = vmatprep.subr.bf16.mxu0 %v2758_v1 }
 0x445   :  { %2434 = vmatpush3.bf16.msra.mxu0 %v2980_v23 }
 0x446   :  { %2435 = vmatprep.subr.bf16.mxu0 %v2758_v1 }
 0x449   :  { %2437 = vmatpush3.bf16.msra.mxu0 %v2984_v27 }
 0x44a   :  { %2438 = vmatprep.subr.bf16.mxu0 %v2758_v1 }
 0x44d   :  { %2440 = vmatpush3.bf16.msra.mxu0 %v2988_v30 }
 0x44e   :  { %2441 = vmatprep.subr.bf16.mxu0 %v2758_v1 }
 0x451   :  { %2443 = vmatpush3.bf16.msra.mxu0 %v2992_v33 }
 0x452   :  { %2444 = vmatprep.subr.bf16.mxu0 %v2758_v1 }
 0x507   :  { %v848_v62 = vpop.f32.mrb[4].mxu0 }
 0x508   :  { %v849_v63 = vadd.f32 1e-05, %v848_v62  ;;  %v2123_v2 = vpop.f32.mrb[5].mxu0 }
 0x50a   :  { %2601 = vrsqrt.f32 %v849_v63 }
 0x514   :  { %v2602_v3 = vpop.eup %2601 }
 0x515   :  { %v856_v5 = vrot.slane %v2602_v3, %v3064_v18 }
 0x517   :  { %v857_v7 = vmul.f32 %v856_v5, %v3067_v24  ;;  %v858_v8 = vmul.f32 %v856_v5, %v3069_v26  ;;  %v2583_v5 = vld [vmem:[#allocation8] sm:$0xff]  }
 0x519   :  { %v866_v10 = vmul.f32 %v1695_v6, %v857_v7  ;;  %v867_v11 = vmul.f32 %v1695_v6, %v858_v8  ;;  %v2584_v7 = vld [vmem:[#allocation8 + $0x8] sm:$0xff]   ;;  %v2585_v8 = vld [vmem:[#allocation8 + $0x10] sm:$0xff]  }
 0x51b   :  { %v875_v14 = vadd.f32 %v1696_v9, %v866_v10  ;;  %v876_v15 = vadd.f32 %v1696_v9, %v867_v11  ;;  %v2586_v9 = vld [vmem:[#allocation8 + $0x18] sm:$0xff]   ;;  %v2587_v10 = vld [vmem:[#allocation8 + $0x20] sm:$0xff]   ;;  %v2588_v11 = vld [vmem:[#allocation8 + $0x28] sm:$0xff]  }
 0x51d   :  { %vm877_vm12 = vcmp.gt.f32.partialorder %v875_v14, 0.0  ;;  %vm878_vm13 = vcmp.gt.f32.partialorder %v876_v15, 0.0  ;;  %v886_v16 = vmul.f32 %v1697_v13, %v875_v14  ;;  %v887_v17 = vmul.f32 %v1697_v13, %v876_v15  ;;  %v2589_v13 = vld [vmem:[#allocation8 + $0x30] sm:$0xff]  }
 0x51f   :  { %v888_v20 = vsel %vm877_vm12, %v875_v14, %v886_v16  ;;  %v889_v21 = vsel %vm878_vm13, %v876_v15, %v887_v17  ;;  %v2590_v14 = vld [vmem:[#allocation8 + $0x38] sm:$0xff]   ;;  %v2592_v15 = vld [vmem:[#allocation8 + $0x80] sm:$0xff]   ;;  %v2593_v17 = vld [vmem:[#allocation8 + $0x88] sm:$0xff]  }
 0x520   :  { %v1732_v22 = vpack.c.bf16 %v888_v20, %v888_v20  ;;  %v1733_v24 = vpack.c.bf16 %v889_v21, %v889_v21  ;;  %v2594_v20 = vld [vmem:[#allocation8 + $0x90] sm:$0xff]   ;;  %v2595_v21 = vld [vmem:[#allocation8 + $0x98] sm:$0xff]  }
 0x522   :  { %v897_v26 = vshrl.u32 %v1732_v22, 16  ;;  %v905_v28 = vshrl.u32 %v1733_v24, 16  ;;  %v900_v31 = vshll.u32 %v1732_v22, 16  ;;  %v908_v34 = vshll.u32 %v1733_v24, 16  ;;  %v2596_v22 = vld [vmem:[#allocation8 + $0xa0] sm:$0xff]   ;;  %v2597_v24 = vld [vmem:[#allocation8 + $0xa8] sm:$0xff]  }
 0x524   :  { %v899_v29 = vrot.slane %v897_v26, 7  ;;  %v907_v32 = vrot.slane %v905_v28, 7  ;;  %v2598_v26 = vld [vmem:[#allocation8 + $0xb0] sm:$0xff]   ;;  %v2599_v28 = vld [vmem:[#allocation8 + $0xb8] sm:$0xff]  }
 0x526   :  { %v902_v38 = vor.u32 %v900_v31, %v899_v29  ;;  %v903_v39 = vrot.slane %v899_v29, 4  ;;  %v910_v41 = vor.u32 %v908_v34, %v907_v32  ;;  %v912_v42 = vrot.slane %v907_v32, 4 }
 0x528   :  { %v911_v44 = vsel %vm2909_vm8, %v903_v39, %v910_v41  ;;  %v916_v45 = vsel %vm2915_vm9, %v902_v38, %v2927_v36  ;;  %v920_v48 = vsel %vm2898_vm4, %v912_v42, %v919_v35 }
 0x529   :  { %918 = vst [vmem:[#allocation2 + $0x4] sm:$0xf] %v911_v44  ;;  %917 = vst [vmem:[#allocation2] sm:$0xf] %v916_v45 }
 0x52a   :  { %921 = vst [vmem:[#allocation2 + $0x8] sm:$0x1] %v920_v48 }
 0x530   :  { %v940_v49 = vld [vmem:[#allocation2] sm:$0xf]  ;;  %v941_v51 = vld [vmem:[#allocation2 + $0x4] sm:$0xf] }
 0x531   :  { %v1700_v52 = vcombine.low %v940_v49, %v941_v51  ;;  %v2582_v55 = vld [vmem:[#allocation2 + $0x8] ss:$0 sps:$4 sm:$0x11]   ;;  %v1165_v56 = vld [vmem:[#allocation2] sm:$0xe] }
 0x532   :  { %v976_v60 = vshll.u32 %v2582_v55, 16  ;;  %v1719_v62 = vcombine.low %v1165_v56, %v941_v51  ;;  %v1187_v19 = vrot.slane %v2582_v55, 1  ;;  %v2591_v16 = vld [vmem:[#allocation2] sm:$0xff]  }
 0x533   :  { %v971_v58 = vshll.u32 %v1700_v52, 16  ;;  %v969_v63 = vshrl.u32 %v1700_v52, 16 }
 0x534   :  { %v1186_v3 = vrot.slane %v1719_v62, 1  ;;  %v978_v36 = vrot.slane %v976_v60, 1  ;;  %v1728_v60 = vld [vmem:[%s3227_s8] ss:$0 sm:$0xff]  ;;  %s2717_s8 = scalar_lea.vmem %s1652_s26, 256 }
 0x535   :  { %v973_v2 = vrot.slane %v971_v58, 1  ;;  %p2718_p12 = scmp.ne.s32.totalorder %s1652_s26, %s2717_s8  ;;  %p2723_p0 = scmp.lt.s32.totalorder %s2717_s8, %s2717_s8 }
 0x536   :  { %v1188_v4 = vsel %vm420_vm11, %v1186_v3, %v1187_v19 }
 0x537   :  { %v974_v25 = vor.u32 %v973_v2, %v969_v63  ;;  %v1729_v63 = vld [vmem:[%s3228_s9] ss:$0 sm:$0xff]  ;;  %p2724_p1 = por %p2723_p0, %p2722_p13 }
 0x539   :  { %v979_v6 = vsel %vm201_vm10, %v974_v25, %v978_v36  ;;  %p2725_p2 = pnand %p2724_p1, %p2718_p12 }
 0x53a   :  { %2141 = vmatmul.mubr.bf16.vlgmr.msra.gmra.mrb[8].mxu1 %v979_v6  ;;  %v2606_v6 = vld [vmem:[#allocation3 + $0x8] sm:$0xff] }
 0x53b   :  { %2145 = vmatpush3.bf16.msra.mxu1 %v2583_v5  ;;  %2160 = vmatprep.mubr.msk.bf16.mxu1 %vm2757_vm0, %v2756_v0  ;;  %v2605_v5 = vld [vmem:[#allocation3] sm:$0xff] }
 0x53c   :  { %2146 = vmatprep.subr.bf16.mxu1 %v2756_v0 }
 0x53f   :  { %2147 = vmatpush3.bf16.msra.mxu1 %v2584_v7 }
 0x540   :  { %2148 = vmatprep.subr.bf16.mxu1 %v2756_v0 }
 0x543   :  { %2149 = vmatpush3.bf16.msra.mxu1 %v2585_v8 }
 0x544   :  { %2150 = vmatprep.subr.bf16.mxu1 %v2756_v0 }
 0x547   :  { %2151 = vmatpush3.bf16.msra.mxu1 %v2586_v9 }
 0x548   :  { %2152 = vmatprep.subr.bf16.mxu1 %v2756_v0 }
 0x54b   :  { %2153 = vmatpush3.bf16.msra.mxu1 %v2587_v10 }
 0x54c   :  { %2154 = vmatprep.subr.bf16.mxu1 %v2756_v0 }
 0x54f   :  { %2155 = vmatpush3.bf16.msra.mxu1 %v2588_v11 }
 0x550   :  { %2156 = vmatprep.subr.bf16.mxu1 %v2756_v0 }
 0x553   :  { %2157 = vmatpush3.bf16.msra.mxu1 %v2589_v13 }
 0x554   :  { %2158 = vmatprep.subr.bf16.mxu1 %v2756_v0 }
 0x557   :  { %2159 = vmatpush3.bf16.msra.mxu1 %v2590_v14 }
 0x558   :  { %2164 = vmatprep.subr.bf16.mxu1 %v2756_v0 }
 0x55a   :  { %2161 = vmatmul.mubr.bf16.vlgmr.msra.gmra.mrb[8].mxu1 %v2591_v16 }
 0x55b   :  { %2165 = vmatpush3.bf16.msra.mxu1 %v2592_v15  ;;  %2180 = vmatprep.mubr.msk.bf16.mxu1 %vm2757_vm0, %v2756_v0 }
 0x55c   :  { %2166 = vmatprep.subr.bf16.mxu1 %v2756_v0 }
 0x55f   :  { %2167 = vmatpush3.bf16.msra.mxu1 %v2593_v17 }
 0x560   :  { %2168 = vmatprep.subr.bf16.mxu1 %v2756_v0 }
 0x563   :  { %2169 = vmatpush3.bf16.msra.mxu1 %v2594_v20 }
 0x564   :  { %2170 = vmatprep.subr.bf16.mxu1 %v2756_v0 }
 0x567   :  { %2171 = vmatpush3.bf16.msra.mxu1 %v2595_v21 }
 0x568   :  { %2172 = vmatprep.subr.bf16.mxu1 %v2756_v0 }
 0x56b   :  { %2173 = vmatpush3.bf16.msra.mxu1 %v2596_v22 }
 0x56c   :  { %2174 = vmatprep.subr.bf16.mxu1 %v2756_v0 }
 0x56f   :  { %2175 = vmatpush3.bf16.msra.mxu1 %v2597_v24 }
 0x570   :  { %2176 = vmatprep.subr.bf16.mxu1 %v2756_v0 }
 0x573   :  { %2177 = vmatpush3.bf16.msra.mxu1 %v2598_v26 }
 0x574   :  { %2178 = vmatprep.subr.bf16.mxu1 %v2756_v0 }
 0x577   :  { %2179 = vmatpush3.bf16.msra.mxu1 %v2599_v28 }
 0x578   :  { %2492 = vmatprep.subr.bf16.mxu1 %v2758_v1 }
 0x57a   :  { %2181 = vmatmul.mubr.bf16.vlgmr.msra.gmra.mrb[8].mxu1 %v1188_v4 }
 0x57b   :  { %2494 = vmatpush3.bf16.msra.mxu1 %v2996_v37  ;;  %2321 = vmatprep.mubr.msk.f32.mxu1 %vm2757_vm0, %v2756_v0 }
 0x57c   :  { %2495 = vmatprep.subr.bf16.mxu1 %v2758_v1 }
 0x57f   :  { %2497 = vmatpush3.bf16.msra.mxu1 %v3000_v40 }
 0x580   :  { %2498 = vmatprep.subr.bf16.mxu1 %v2758_v1 }
 0x583   :  { %2500 = vmatpush3.bf16.msra.mxu1 %v3004_v43 }
 0x584   :  { %2501 = vmatprep.subr.bf16.mxu1 %v2758_v1 }
 0x587   :  { %2503 = vmatpush3.bf16.msra.mxu1 %v3008_v47 }
 0x588   :  { %2504 = vmatprep.subr.bf16.mxu1 %v2758_v1 }
 0x58b   :  { %2506 = vmatpush3.bf16.msra.mxu1 %v3012_v50 }
 0x58c   :  { %2507 = vmatprep.subr.bf16.mxu1 %v2758_v1 }
 0x58f   :  { %2509 = vmatpush3.bf16.msra.mxu1 %v3016_v54 }
 0x590   :  { %2510 = vmatprep.subr.bf16.mxu1 %v2758_v1 }
 0x593   :  { %2512 = vmatpush3.bf16.msra.mxu1 %v3020_v57 }
 0x594   :  { %2513 = vmatprep.subr.bf16.mxu1 %v2758_v1 }
 0x597   :  { %2515 = vmatpush3.bf16.msra.mxu1 %v3040_v12 }
 0x64d   :  { %v1272_v29 = vpop.f32.mrb[8].mxu1 }
 0x64e   :  { %v2182_v31 = vpop.f32.mrb[9].mxu1 }
 0x64f   :  { %v1275_v32 = vpop.f32.mrb[10].mxu1 }
 0x650   :  { %v1281_v34 = vadd.f32 %v1275_v32, %v1272_v29  ;;  %v2183_v35 = vpop.f32.mrb[11].mxu1 }
 0x652   :  { %v1282_v38 = vrot.slane %v1281_v34, 4 }
 0x654   :  { %v1283_v39 = vadd.f32 %v1282_v38, %v1281_v34 }
 0x656   :  { %v1284_v41 = vrot.slane %v1283_v39, 2 }
 0x658   :  { %v1285_v42 = vadd.f32 %v1284_v41, %v1283_v39 }
 0x65a   :  { %v1286_v44 = vrot.slane %v1285_v42, 1 }
 0x65c   :  { %v1287_v45 = vadd.f32 %v1286_v44, %v1285_v42 }
 0x65e   :  { %2217 = vmatmul.mubr.f32.vlgmr.msra.gmra.mrb[6].mxu0 %v1287_v45 }
 0x65f   :  { %2446 = vmatpush3.bf16.msra.mxu0 %v2996_v37  ;;  %2251 = vmatprep.mubr.msk.f32.mxu0 %vm2757_vm0, %v2756_v0 }
 0x660   :  { %2447 = vmatprep.subr.bf16.mxu0 %v2758_v1 }
 0x663   :  { %2449 = vmatpush3.bf16.msra.mxu0 %v3000_v40 }
 0x664   :  { %2450 = vmatprep.subr.bf16.mxu0 %v2758_v1 }
 0x667   :  { %2452 = vmatpush3.bf16.msra.mxu0 %v3004_v43 }
 0x668   :  { %2453 = vmatprep.subr.bf16.mxu0 %v2758_v1 }
 0x66b   :  { %2455 = vmatpush3.bf16.msra.mxu0 %v3008_v47 }
 0x66c   :  { %2456 = vmatprep.subr.bf16.mxu0 %v2758_v1 }
 0x66f   :  { %2458 = vmatpush3.bf16.msra.mxu0 %v3012_v50 }
 0x670   :  { %2459 = vmatprep.subr.bf16.mxu0 %v2758_v1 }
 0x673   :  { %2461 = vmatpush3.bf16.msra.mxu0 %v3016_v54 }
 0x674   :  { %2462 = vmatprep.subr.bf16.mxu0 %v2758_v1 }
 0x677   :  { %2464 = vmatpush3.bf16.msra.mxu0 %v3020_v57 }
 0x678   :  { %2465 = vmatprep.subr.bf16.mxu0 %v2758_v1 }
 0x67b   :  { %2467 = vmatpush3.bf16.msra.mxu0 %v3040_v12 }
 0x67c   :  { %2468 = vmatprep.subr.bf16.mxu0 %v2758_v1 }
 0x731   :  { %v1370_v37 = vpop.f32.mrb[6].mxu0 }
 0x732   :  { %v1374_v40 = vmul.f32 0.001953125, %v1370_v37  ;;  %v2218_v43 = vpop.f32.mrb[7].mxu0 }
 0x734   :  { %2252 = vmatmul.mubr.f32.vlgmr.msra.gmra.mrb[8].mxu0 %v1374_v40 }
 0x735   :  { %2470 = vmatpush3.bf16.msra.mxu0 %v2937_v46  ;;  %2286 = vmatprep.mubr.msk.f32.mxu0 %vm2757_vm0, %v2756_v0 }
 0x736   :  { %2471 = vmatprep.subr.bf16.mxu0 %v2758_v1 }
 0x739   :  { %2473 = vmatpush3.bf16.msra.mxu0 %v2941_v53 }
 0x73a   :  { %2474 = vmatprep.subr.bf16.mxu0 %v2758_v1 }
 0x73d   :  { %2476 = vmatpush3.bf16.msra.mxu0 %v2946_v59 }
 0x73e   :  { %2477 = vmatprep.subr.bf16.mxu0 %v2758_v1 }
 0x741   :  { %2479 = vmatpush3.bf16.msra.mxu0 %v2953_v61 }
 0x742   :  { %2480 = vmatprep.subr.bf16.mxu0 %v2758_v1 }
 0x745   :  { %2482 = vmatpush3.bf16.msra.mxu0 %v2980_v23 }
 0x746   :  { %2483 = vmatprep.subr.bf16.mxu0 %v2758_v1 }
 0x749   :  { %2485 = vmatpush3.bf16.msra.mxu0 %v2984_v27 }
 0x74a   :  { %2486 = vmatprep.subr.bf16.mxu0 %v2758_v1 }
 0x74d   :  { %2488 = vmatpush3.bf16.msra.mxu0 %v2988_v30 }
 0x74e   :  { %2489 = vmatprep.subr.bf16.mxu0 %v2758_v1 }
 0x751   :  { %2491 = vmatpush3.bf16.msra.mxu0 %v2992_v33 }
 0x807   :  { %v1457_v0 = vpop.f32.mrb[8].mxu0 }
 0x808   :  { %v1464_v46 = vrot.slane %v1457_v0, %v3064_v18  ;;  %v2253_v53 = vpop.f32.mrb[9].mxu0 }
 0x80a   :  { %v1465_v59 = vsub.f32 %v1272_v29, %v1464_v46  ;;  %v1466_v61 = vsub.f32 %v1275_v32, %v1464_v46 }
 0x80c   :  { %v1467_v47 = vmul.f32 %v1465_v59, %v1465_v59  ;;  %v1468_v23 = vmul.f32 %v1466_v61, %v1466_v61 }
 0x80e   :  { %v1469_v50 = vadd.f32 %v1468_v23, %v1467_v47 }
 0x810   :  { %v1470_v54 = vrot.slane %v1469_v50, 4 }
 0x812   :  { %v1471_v57 = vadd.f32 %v1470_v54, %v1469_v50 }
 0x814   :  { %v1472_v27 = vrot.slane %v1471_v57, 2 }
 0x816   :  { %v1473_v12 = vadd.f32 %v1472_v27, %v1471_v57 }
 0x818   :  { %v1474_v48 = vrot.slane %v1473_v12, 1 }
 0x81a   :  { %v1475_v49 = vadd.f32 %v1474_v48, %v1473_v12 }
 0x81c   :  { %2287 = vmatmul.mubr.f32.vlgmr.msra.gmra.mrb[10].mxu0 %v1475_v49 }
 0x8ef   :  { %v1542_v30 = vpop.f32.mrb[10].mxu0 }
 0x8f0   :  { %v1546_v1 = vmul.f32 0.001953125, %v1542_v30  ;;  %v2288_v51 = vpop.f32.mrb[11].mxu0 }
 0x8f2   :  { %2322 = vmatmul.mubr.f32.vlgmr.msra.gmra.mrb[6].mxu1 %v1546_v1 }
 0x9c5   :  { %v1613_v33 = vpop.f32.mrb[6].mxu1 }
 0x9c6   :  { %v1614_v52 = vadd.f32 1e-05, %v1613_v33  ;;  %v2323_v55 = vpop.f32.mrb[7].mxu1 }
 0x9c8   :  { %2603 = vrsqrt.f32 %v1614_v52 }
 0x9d2   :  { %v2604_v56 = vpop.eup %2603 }
 0x9d3   :  { %v1621_v58 = vrot.slane %v2604_v56, %v3064_v18 }
 0x9d5   :  { %v1622_v62 = vmul.f32 %v1621_v58, %v1465_v59  ;;  %v1623_v19 = vmul.f32 %v1621_v58, %v1466_v61 }
 0x9d7   :  { %v1631_v2 = vmul.f32 %v1728_v60, %v1622_v62  ;;  %v1632_v3 = vmul.f32 %v1728_v60, %v1623_v19 }
 0x9d9   :  { %v1640_v25 = vadd.f32 %v1729_v63, %v1631_v2  ;;  %v1641_v36 = vadd.f32 %v1729_v63, %v1632_v3 }
 0x9db   :  { %v1642_v4 = vadd.f32 %v2605_v5, %v1640_v25  ;;  %v1643_v18 = vadd.f32 %v2606_v6, %v1641_v36 }
 0x9dd   :  { %1644 = vst [vmem:[#allocation12] sm:$0xff] %v1642_v4  ;;  %1645 = vst [vmem:[#allocation12 + $0x8] sm:$0xff] %v1643_v18 }
 0x9de   :  { %2728 = shalt.err (!%p2725_p2)
}
 0x9df   :  { %s2729_s0 = scalar_lea.hbm %s3229_s10, 256 }
 0x9e0   :  { %p2730_p3 = scmp.ne.s32.totalorder %s3229_s10, %s2729_s0  ;;  %p2733_p4 = scmp.lt.u32.totalorder %s2729_s0, %s3229_s10 }
 0x9e2   :  { %p2735_p5 = pnand %p2733_p4, %p2730_p3 }
 0x9e4   :  { %2738 = shalt.err (!%p2735_p5)
}
 0x9e5   :  { %1657 = dma.vmem_to_hbm [thread:$0]  %s1652_s26, 256, %s3229_s10, [#allocation5], %s2752_s14, %s2752_s14, %s2753_s19  }
 0x9e6   :  { %2745 = dma.done.wait [#allocation5], 256  }
 0x9e7   :  { %2746 = vsyncadd [#allocation5], 4294967040 }
 0x9e8   :  { %1661 = vsyncpa [#allocation4], 1 }
 0x9e9   :  { %1662 = vsyncpa [#allocation7], 1 }
 0x9ea   :  { %1663 = vsyncpa [#allocation10], 1 }
 0x9eb   :  { %1664 = vsyncpa [#allocation5], 1 }

</bundles_post_ra>
